<compile_context>
chip_gen: v6e
topology: v6e:2x2x1
jax: 0.10.0
libtpu: 0.0.40
codegen_flags: <defaults>
</compile_context>

<pallas_src>
import functools

import jax
import jax.numpy as jnp
from jax import lax
from jax.experimental import pallas as pl
from jax.experimental.pallas import tpu as pltpu

# (in_features, out_features) for each of the 5 Linear layers.
LAYER_DIMS = [(41, 36), (36, 24), (24, 12), (12, 6), (6, 2)]
IN_DIM = LAYER_DIMS[0][0]      # 41
OUT_DIM = LAYER_DIMS[-1][1]    # 2


def _round8(n):
    return ((n + 7) // 8) * 8


# Sublane-aligned (padded) layer sizes and row offsets inside the packed slab.
FO_PAD = [_round8(fo) for _, fo in LAYER_DIMS]         # [40, 24, 16, 8, 8]
ROW_OFF = [0]
for _p in FO_PAD[:-1]:
    ROW_OFF.append(ROW_OFF[-1] + _p)                   # [0, 40, 64, 80, 88]
SLAB_ROWS = sum(FO_PAD)                                # 96
# Contraction width per layer: layer 0 contracts the raw 41 input features,
# layer l>0 contracts the previous layer's padded row count.
FI_PAD = [IN_DIM] + FO_PAD[:-1]                        # [41, 40, 24, 16, 8]
SLAB_COLS = _round8(max(FI_PAD))                       # 48


def _mlp_kernel(x_ref, w_ref, b_ref, o_ref):
    """Fused 5-layer tanh MLP on one batch tile.

    x_ref: (tile, 41)   natural-layout activations (one contiguous HBM chunk)
    w_ref: (96, 48)     packed, (8,128)-aligned weights (PyTorch (out, in) layout)
    b_ref: (96, 1)      packed biases, lane-0 aligned
    o_ref: (2, tile)    lane-dense output tile (batch on the lane axis)
    """
    # ---- Layer 1: contract the feature axis of W (dim 1) with the feature axis
    # of the natural-layout x tile (dim 1): (40, 41) x (tile, 41) -> (40, tile).
    # This lands the activations directly in the transposed (features, batch)
    # form without any HBM-side transpose.
    x = x_ref[...]                                                  # (tile, 41)
    w0 = w_ref[ROW_OFF[0]:ROW_OFF[0] + FO_PAD[0], 0:IN_DIM]         # (40, 41)
    b0 = b_ref[ROW_OFF[0]:ROW_OFF[0] + FO_PAD[0], :]                # (40, 1)
    h = jnp.tanh(
        lax.dot_general(w0, x, (((1,), (1,)), ((), ())),
                        preferred_element_type=jnp.float32) + b0)   # (40, tile)

    # ---- Layers 2..5: stay in the transposed (features, batch) layout; every
    # slice below starts on an 8-sublane boundary / lane 0 (zero-cost views),
    # and the padded rows/cols are zeros so they are numerically inert.
    for l in range(1, len(LAYER_DIMS)):
        ro, fo_p, fi_p = ROW_OFF[l], FO_PAD[l], FI_PAD[l]
        w = w_ref[ro:ro + fo_p, 0:fi_p]                             # (fo_p, fi_p)
        b = b_ref[ro:ro + fo_p, :]                                  # (fo_p, 1)
        h = jnp.tanh(jnp.dot(w, h, preferred_element_type=jnp.float32) + b)

    o_ref[...] = h[0:OUT_DIM, :].astype(o_ref.dtype)                # (2, tile)


def _pack_params(params):
    """Pack [(W (out,in), b (out,)), ...] into aligned (96,48) / (96,1) slabs."""
    w_slab = jnp.zeros((SLAB_ROWS, SLAB_COLS), jnp.float32)
    b_slab = jnp.zeros((SLAB_ROWS, 1), jnp.float32)
    for (w, b), (fi, fo), ro in zip(params, LAYER_DIMS, ROW_OFF):
        w_slab = w_slab.at[ro:ro + fo, 0:fi].set(w.astype(jnp.float32))
        b_slab = b_slab.at[ro:ro + fo, 0].set(b.astype(jnp.float32))
    return w_slab, b_slab


def kddcup99_forward(x, params, *, batch_tile=8192):
    """x: (B, 41) float; params: list of (W (out,in), b (out,)) PyTorch layout."""
    B, f_in = x.shape
    assert f_in == IN_DIM
    x = x.astype(jnp.float32)

    # Batch maps to the 128-wide lane axis of the activations.  Clamp the tile
    # to the 128-rounded batch, and to 16Ki rows so the double-buffered input
    # block stays well under v7x's 32 MiB scoped-VMEM default (64 MiB total).
    b128 = pl.cdiv(B, 128) * 128
    tile = max(128, (min(batch_tile, 16384, b128) // 128) * 128)
    # Megacore (v7x, 2 TCs): prefer >= 2 grid steps when the batch allows so the
    # "parallel" batch axis actually shards; harmless on single-TC v5e/v6e.
    if b128 >= 256 and pl.cdiv(B, tile) < 2:
        tile = max(128, (pl.cdiv(b128, 2) // 128) * 128)
    grid = pl.cdiv(B, tile)

    w_slab, b_slab = _pack_params(params)

    flops = 2 * B * sum(fi * fo for fi, fo in LAYER_DIMS)
    transcendentals = B * sum(fo for _, fo in LAYER_DIMS)
    bytes_accessed = 4 * (B * IN_DIM + B * OUT_DIM
                          + SLAB_ROWS * (SLAB_COLS + 1))

    out_t = pl.pallas_call(
        _mlp_kernel,
        out_shape=jax.ShapeDtypeStruct((OUT_DIM, B), jnp.float32),
        grid_spec=pltpu.PrefetchScalarGridSpec(
            num_scalar_prefetch=0,
            grid=(grid,),
            in_specs=[
                # Natural-layout activation tile: contiguous HBM rows.
                pl.BlockSpec((tile, IN_DIM), lambda i: (i, 0)),
                # Grid-invariant packed weights / biases, VMEM-resident.
                pl.BlockSpec((SLAB_ROWS, SLAB_COLS), lambda i: (0, 0)),
                pl.BlockSpec((SLAB_ROWS, 1), lambda i: (0, 0)),
            ],
            out_specs=pl.BlockSpec((OUT_DIM, tile), lambda i: (0, i)),
        ),
        compiler_params=pltpu.CompilerParams(
            dimension_semantics=("parallel",)),      # megacore-shardable batch
        cost_estimate=pl.CostEstimate(
            flops=flops,
            transcendentals=transcendentals,
            bytes_accessed=bytes_accessed),
    )(x, w_slab, b_slab)

    # Tiny (2, B) -> (B, 2) transpose to match the PyTorch output layout.
    return out_t.T


def init_params(key):
    """Deterministic init mimicking torch.nn.Linear's U(-1/sqrt(fan_in), ...)."""
    params = []
    for fi, fo in LAYER_DIMS:
        key, kw, kb = jax.random.split(key, 3)
        bound = 1.0 / (fi ** 0.5)
        w = jax.random.uniform(kw, (fo, fi), jnp.float32, -bound, bound)  # (out, in)
        b = jax.random.uniform(kb, (fo,), jnp.float32, -bound, bound)
        params.append((w, b))
    return params


def reference_forward(x, params):
    h = x.astype(jnp.float32)
    for w, b in params:
        h = jnp.tanh(h @ w.T + b)        # PyTorch Linear semantics: x @ W^T + b
    return h


if __name__ == "__main__":
    key = jax.random.PRNGKey(0)
    key, kx = jax.random.split(key)

    # Non-multiple batch: exercises a multi-step parallel grid and a partial
    # final block (no wrapper-side padding).
    B = 300
    x = jax.random.normal(kx, (B, IN_DIM), jnp.float32)
    params = init_params(key)

    fwd = jax.jit(functools.partial(kddcup99_forward, batch_tile=8192))
    out = jax.block_until_ready(fwd(x, params))

    ref = reference_forward(x, params)
    assert out.shape == (B, OUT_DIM), out.shape
    max_err = float(jnp.max(jnp.abs(out - ref)))
    assert jnp.allclose(out, ref, atol=1e-5, rtol=1e-5), max_err

    print("KERNEL_OK")
</pallas_src>

<mosaic_0001>
module attributes {stable_mosaic.version = 11 : i64} {
  func.func @_mlp_kernel(%arg0: i32, %arg1: memref<128x41xf32, #tpu.memory_space<vmem>>, %arg2: memref<96x48xf32, #tpu.memory_space<vmem>>, %arg3: memref<96x1xf32, #tpu.memory_space<vmem>>, %arg4: memref<2x128xf32, #tpu.memory_space<vmem>>) attributes {dimension_semantics = [#tpu.dimension_semantics<parallel>], iteration_bounds = array<i64: 3>, scalar_prefetch = 0 : i64, scratch_operands = 0 : i64, tpu.core_type = #tpu.core_type<tc>, window_params = [{transform_indices = @transform_0, window_bounds = array<i64: 128, 41>}, {pipeline_mode = #tpu.pipeline_mode<synchronous>, transform_indices = @transform_1, window_bounds = array<i64: 96, 48>}, {pipeline_mode = #tpu.pipeline_mode<synchronous>, transform_indices = @transform_2, window_bounds = array<i64: 96, 1>}, {transform_indices = @transform_3, window_bounds = array<i64: 2, 128>}]} {
    %c0 = arith.constant 0 : index
    %c0_0 = arith.constant 0 : index
    %0 = vector.load %arg1[%c0, %c0_0] : memref<128x41xf32, #tpu.memory_space<vmem>>, vector<128x41xf32>
    %c0_1 = arith.constant 0 : index
    %c0_2 = arith.constant 0 : index
    %1 = vector.load %arg2[%c0_1, %c0_2] : memref<96x48xf32, #tpu.memory_space<vmem>>, vector<40x41xf32>
    %c0_3 = arith.constant 0 : index
    %c0_4 = arith.constant 0 : index
    %2 = vector.load %arg3[%c0_3, %c0_4] : memref<96x1xf32, #tpu.memory_space<vmem>>, vector<40x1xf32>
    %cst = arith.constant dense<0.000000e+00> : vector<40x128xf32>
    %3 = tpu.matmul %1, %0, %cst {dimension_numbers = #tpu.dot_dimension_numbers<[1], [1], [0], [0], [0, 0, 1, 0], [], []>} : vector<40x41xf32>, vector<128x41xf32>, vector<40x128xf32> -> vector<40x128xf32>
    %4 = vector.broadcast %2 : vector<40x1xf32> to vector<40x128xf32>
    %5 = arith.addf %3, %4 : vector<40x128xf32>
    %6 = math.tanh %5 : vector<40x128xf32>
    %c40 = arith.constant 40 : index
    %c0_5 = arith.constant 0 : index
    %7 = vector.load %arg2[%c40, %c0_5] : memref<96x48xf32, #tpu.memory_space<vmem>>, vector<24x40xf32>
    %c40_6 = arith.constant 40 : index
    %c0_7 = arith.constant 0 : index
    %8 = vector.load %arg3[%c40_6, %c0_7] : memref<96x1xf32, #tpu.memory_space<vmem>>, vector<24x1xf32>
    %cst_8 = arith.constant dense<0.000000e+00> : vector<24x128xf32>
    %9 = tpu.matmul %7, %6, %cst_8 {dimension_numbers = #tpu.dot_dimension_numbers<[1], [0], [0], [1], [0, 0, 1, 1], [], []>} : vector<24x40xf32>, vector<40x128xf32>, vector<24x128xf32> -> vector<24x128xf32>
    %10 = vector.broadcast %8 : vector<24x1xf32> to vector<24x128xf32>
    %11 = arith.addf %9, %10 : vector<24x128xf32>
    %12 = math.tanh %11 : vector<24x128xf32>
    %c64 = arith.constant 64 : index
    %c0_9 = arith.constant 0 : index
    %13 = vector.load %arg2[%c64, %c0_9] : memref<96x48xf32, #tpu.memory_space<vmem>>, vector<16x24xf32>
    %c64_10 = arith.constant 64 : index
    %c0_11 = arith.constant 0 : index
    %14 = vector.load %arg3[%c64_10, %c0_11] : memref<96x1xf32, #tpu.memory_space<vmem>>, vector<16x1xf32>
    %cst_12 = arith.constant dense<0.000000e+00> : vector<16x128xf32>
    %15 = tpu.matmul %13, %12, %cst_12 {dimension_numbers = #tpu.dot_dimension_numbers<[1], [0], [0], [1], [0, 0, 1, 1], [], []>} : vector<16x24xf32>, vector<24x128xf32>, vector<16x128xf32> -> vector<16x128xf32>
    %16 = vector.broadcast %14 : vector<16x1xf32> to vector<16x128xf32>
    %17 = arith.addf %15, %16 : vector<16x128xf32>
    %18 = math.tanh %17 : vector<16x128xf32>
    %c80 = arith.constant 80 : index
    %c0_13 = arith.constant 0 : index
    %19 = vector.load %arg2[%c80, %c0_13] : memref<96x48xf32, #tpu.memory_space<vmem>>, vector<8x16xf32>
    %c80_14 = arith.constant 80 : index
    %c0_15 = arith.constant 0 : index
    %20 = vector.load %arg3[%c80_14, %c0_15] : memref<96x1xf32, #tpu.memory_space<vmem>>, vector<8x1xf32>
    %cst_16 = arith.constant dense<0.000000e+00> : vector<8x128xf32>
    %21 = tpu.matmul %19, %18, %cst_16 {dimension_numbers = #tpu.dot_dimension_numbers<[1], [0], [0], [1], [0, 0, 1, 1], [], []>} : vector<8x16xf32>, vector<16x128xf32>, vector<8x128xf32> -> vector<8x128xf32>
    %22 = vector.broadcast %20 : vector<8x1xf32> to vector<8x128xf32>
    %23 = arith.addf %21, %22 : vector<8x128xf32>
    %24 = math.tanh %23 : vector<8x128xf32>
    %c88 = arith.constant 88 : index
    %c0_17 = arith.constant 0 : index
    %25 = vector.load %arg2[%c88, %c0_17] : memref<96x48xf32, #tpu.memory_space<vmem>>, vector<8x8xf32>
    %c88_18 = arith.constant 88 : index
    %c0_19 = arith.constant 0 : index
    %26 = vector.load %arg3[%c88_18, %c0_19] : memref<96x1xf32, #tpu.memory_space<vmem>>, vector<8x1xf32>
    %cst_20 = arith.constant dense<0.000000e+00> : vector<8x128xf32>
    %27 = tpu.matmul %25, %24, %cst_20 {dimension_numbers = #tpu.dot_dimension_numbers<[1], [0], [0], [1], [0, 0, 1, 1], [], []>} : vector<8x8xf32>, vector<8x128xf32>, vector<8x128xf32> -> vector<8x128xf32>
    %28 = vector.broadcast %26 : vector<8x1xf32> to vector<8x128xf32>
    %29 = arith.addf %27, %28 : vector<8x128xf32>
    %30 = math.tanh %29 : vector<8x128xf32>
    %31 = vector.extract_strided_slice %30 {offsets = [0, 0], sizes = [2, 128], strides = [1, 1]} : vector<8x128xf32> to vector<2x128xf32>
    %c0_21 = arith.constant 0 : index
    %c0_22 = arith.constant 0 : index
    %32 = vector.load %arg4[%c0_21, %c0_22] : memref<2x128xf32, #tpu.memory_space<vmem>>, vector<2x128xf32>
    tpu.vector_store %arg4[%c0_21, %c0_22], %31 {strides = array<i32>} : memref<2x128xf32, #tpu.memory_space<vmem>>, vector<2x128xf32>,
    return
  }
  func.func @transform_0(%arg0: i32) -> (i32, i32) {
    %c0_i32 = arith.constant 0 : i32
    %c0_i32_0 = arith.constant 0 : i32
    return %arg0, %c0_i32 : i32, i32
  }
  func.func @transform_1(%arg0: i32) -> (i32, i32) {
    %c0_i32 = arith.constant 0 : i32
    %c0_i32_0 = arith.constant 0 : i32
    %c0_i32_1 = arith.constant 0 : i32
    return %c0_i32, %c0_i32_0 : i32, i32
  }
  func.func @transform_2(%arg0: i32) -> (i32, i32) {
    %c0_i32 = arith.constant 0 : i32
    %c0_i32_0 = arith.constant 0 : i32
    %c0_i32_1 = arith.constant 0 : i32
    return %c0_i32, %c0_i32_0 : i32, i32
  }
  func.func @transform_3(%arg0: i32) -> (i32, i32) {
    %c0_i32 = arith.constant 0 : i32
    %c0_i32_0 = arith.constant 0 : i32
    return %c0_i32, %arg0 : i32, i32
  }
}

</mosaic_0001>

<bundles_post_ra>
// kernel: kddcup99_forward.1
= control target key start
LH: loop header
LB: loop body
LE: loop exit
PB: predicated region body
PF: predicated region fallthrough
CT: control target
= control target key end

     0   :  { %8 = vsyncpa [#allocation3], 0  ;;  %s1419_s0 = inlined_call_operand.vmem [shape: f32[300,41], index: 0, kind: input, shape index: {}]   ;;  %s1420_s1 = inlined_call_operand.vmem [shape: f32[96,48], index: 1, kind: input, shape index: {}]   ;;  %s1421_s2 = inlined_call_operand.vmem [shape: f32[96,1], index: 2, kind: input, shape index: {}]   ;;  %s1422_s3 = inlined_call_operand.hbm [shape: f32[2,300], index: 3, kind: output, shape index: {}]  }
   0x1   :  { %10 = vsyncpa [#allocation3 + $0x1], 0  ;;  %s1170_s12 = smov 0   ;;  %s1172_s13 = smov 0  }
   0x2   :  { %s1174_s14 = smov 0   ;;  %s1176_s15 = smov 0  }
   0x3 LB: > { %s1191_s16 = sadd.s32 4294967295, %s1144_s15   ;;  %s851_s17 = sadd.s32 4294967294, %s1144_s15   ;;  %s1144_s15 = sphi %s1176_s15, %s1428_s15   ;;  %s1140_s14 = sphi %s1174_s14, %s1427_s14   ;;  %s1136_s13 = sphi %s1172_s13, %s1426_s13   ;;  %s1132_s12 = sphi %s1170_s12, %s1425_s12  }
   0x4   : > { %s1195_s18 = sadd.s32 1, %s1144_s15   ;;  %s91_s19 = sadd.s32 1, %s1140_s14 }
   0x5   : > { %s88_s20 = ssub.s32 %s1144_s15, %s1195_s18  ;;  %p101_p0 = scmp.ne.s32.totalorder %s1140_s14, %s1136_s13 }
   0x6   : > { %p89_p1 = scmp.eq.s32.totalorder %s88_s20, 0  ;;  %p102_p2 = scmp.eq.s32.totalorder %s1191_s16, 2 }
   0x7   : > { %p107_p3 = scmp.ne.s32.totalorder %s1136_s13, %s1132_s12  ;;  %p108_p4 = scmp.eq.s32.totalorder %s851_s17, 2 }
   0x8   : > { %s1206_s21 = scalar_select %p89_p1, %s1140_s14, %s91_s19  }
   0x9   : > { %p1208_p5 = por %p102_p2, %p101_p0  ;;  %p1212_p6 = por %p108_p4, %p107_p3 }
   0xa   : > { %p854_p7 = scmp.ge.s32.totalorder %s1144_s15, 1  ;;  %p149_p8 = scmp.lt.s32.totalorder %s1144_s15, 4 }
   0xc   : > { %p150_p9 = pnand %p854_p7, %p149_p8 }
   0xd   : > { %s856_s24 = sshll.u32 (!%p150_p9), %s1191_s16, 4  ;;  %s174_s20 = sand.u32 (!%p150_p9), 1, %s1136_s13  }
   0xe   : > { %153 = sbr.rel (%p150_p9) target bundleno = 1188 (0x4a4), region = 32  ;;  %p182_p10 = scmp.lt.s32.totalorder (!%p150_p9), %s856_s24, 37 }
   0xf   : > { %s887_s25 = sshll.u32 (!%p150_p9), %s1191_s16, 5  ;;  %s779_s4 = scalar_lea.sflag (!%p150_p9), [#allocation3], %s174_s20 }
  0x10   : > { %s1384_s30 = scalar_lea.hbm (!%p150_p9), %s1422_s3, %s887_s25 }
  0x13   : > { %v1146_v0 = vmov 0.0   ;;  %vm1147_vm0 = vmmov 0   ;;  %v1148_v1 = vmov 0   ;;  %v216_v2 = vld [vmem:[%s1421_s2 + $0x20] sm:$0xff]  ;;  %v214_v3 = vld [vmem:[%s1421_s2 + $0x10] sm:$0xff]  ;;  %s1430_s24 = smov (!%p182_p10, %s856_s24), 37 }
  0x14   : > { %929 = vmatprep.subr.mxu0 %v1146_v0  ;;  %961 = vmatprep.mubr.msk.f32.mxu0 %vm1147_vm0, %v1146_v0  ;;  %v215_v4 = vld [vmem:[%s1421_s2 + $0x18] sm:$0xff]  ;;  %v213_v5 = vld [vmem:[%s1421_s2 + $0x8] sm:$0xff]  ;;  %s857_s6 = sshll.u32 %s1430_s24, 3  ;;  %vm242_vm1 = vcmask 334848   ;;  %v212_v7 = vld [vmem:[%s1421_s2] sm:$0xff]  ;;  %vm422_vm2 = vcmask 326656  }
  0x15   : > { %1058 = vset.pattern.permute.xlu0 %v1148_v1  ;;  %1059 = vset.pattern.permute.xlu1 %v1148_v1  ;;  %s1240_s9 = scalar_lea.vmem %s1419_s0, %s857_s6  ;;  %v406_v8 = vld [vmem:[%s1421_s2 + $0x38] sm:$0xff]  ;;  %v405_v10 = vld [vmem:[%s1421_s2 + $0x30] sm:$0xff]  ;;  %v404_v11 = vld [vmem:[%s1421_s2 + $0x28] sm:$0xff]  ;;  %vm529_vm3 = vcmask 195584   ;;  %vm620_vm4 = vcmask 130048   ;;  %vm702_vm5 = vcmask 64512  }
  0x16   : > { %239 = vperm.xlu0 %1058, %v216_v2   ;;  %229 = vperm.xlu1 %1059, %v214_v3   ;;  %v206_v6 = vld [vmem:[%s1240_s9 + $0x78] sm:$0xff]  ;;  %v205_v9 = vld [vmem:[%s1240_s9 + $0x70] sm:$0xff]  ;;  %v204_v12 = vld [vmem:[%s1240_s9 + $0x68] sm:$0xff]  ;;  %s855_s24 = sshll.u32 %s174_s20, 1  ;;  %s1149_s6 = smov [#allocation2]  }
  0x17   : > { %976 = vmatprep.subr.mxu1 %v1146_v0  ;;  %986 = vmatprep.mubr.msk.f32.mxu1 %vm1147_vm0, %v1146_v0  ;;  %v518_v13 = vld [vmem:[%s1421_s2 + $0x48] sm:$0xff]  ;;  %v517_v14 = vld [vmem:[%s1421_s2 + $0x40] sm:$0xff]  ;;  %v614_v16 = vld [vmem:[%s1421_s2 + $0x50] sm:$0xff]  ;;  %s176_s26 = scalar_lea.vmem [#allocation2], %s855_s24  ;;  %s1088_s7 = sshll.u32 %s1149_s6, 4  ;;  %s1089_s7 = int_to_ptr.vmem [resolvable:$false] %s1088_s7 }
  0x18   : > { %930 = vmatpush3.xpose.msk.msra.mxu0 %vm242_vm1, %v206_v6  ;;  %v203_v15 = vld [vmem:[%s1240_s9 + $0x60] sm:$0xff]  ;;  %v696_v17 = vld [vmem:[%s1421_s2 + $0x58] sm:$0xff]  ;;  %v201_v19 = vld [vmem:[%s1240_s9 + $0x50] sm:$0xff]  ;;  %s792_s27 = sshll.u32 %s176_s26, 4  ;;  %s1090_s16 = scalar_lea.vmem %s1089_s7, 64  ;;  %s793_s27 = int_to_ptr.vmem [resolvable:$true] %s792_s27 }
  0x19   : > { %931 = vmatprep.subr.mxu0 %v1146_v0  ;;  %v202_v18 = vld [vmem:[%s1240_s9 + $0x58] sm:$0xff]  ;;  %v200_v20 = vld [vmem:[%s1240_s9 + $0x48] sm:$0xff]  ;;  %v199_v21 = vld [vmem:[%s1240_s9 + $0x40] sm:$0xff]  ;;  %s1084_s5 = scalar_lea.vmem %s793_s27, 32  ;;  %p1091_p0 = scmp.lt.s32.totalorder %s793_s27, %s1089_s7 }
  0x1a   : > { %234 = vperm.xlu0 %1058, %v215_v4   ;;  %224 = vperm.xlu1 %1059, %v213_v5   ;;  %v198_v22 = vld [vmem:[%s1240_s9 + $0x38] sm:$0xff]  ;;  %v197_v23 = vld [vmem:[%s1240_s9 + $0x30] sm:$0xff]  ;;  %v196_v24 = vld [vmem:[%s1240_s9 + $0x28] sm:$0xff]  ;;  %p1085_p11 = scmp.ne.s32.totalorder %s793_s27, %s1084_s5  ;;  %p1092_p1 = scmp.lt.s32.totalorder %s1090_s16, %s1084_s5 }
  0x1b   : > { %v195_v25 = vld [vmem:[%s1240_s9 + $0x20] sm:$0xff]  ;;  %v194_v26 = vld [vmem:[%s1240_s9 + $0x18] sm:$0xff]  ;;  %v193_v27 = vld [vmem:[%s1240_s9 + $0x10] sm:$0xff] }
  0x1c   : > { %932 = vmatpush3.xpose.msk.msra.mxu0 %vm242_vm1, %v205_v9  ;;  %v192_v28 = vld [vmem:[%s1240_s9 + $0x8] sm:$0xff]  ;;  %v191_v29 = vld [vmem:[%s1240_s9] sm:$0xff]  ;;  %v209_v32 = vld [vmem:[%s1420_s1 + $0x10] sm:$0xff]  ;;  %p1086_p12 = pnand %p1085_p11, %p1208_p5  ;;  %p1093_p2 = por %p1092_p1, %p1091_p0 }
  0x1d   : > { %933 = vmatprep.subr.mxu0 %v1146_v0  ;;  %v207_v30 = vld [vmem:[%s1420_s1] sm:$0xff]  ;;  %v208_v31 = vld [vmem:[%s1420_s1 + $0x8] sm:$0xff]  ;;  %v210_v33 = vld [vmem:[%s1420_s1 + $0x18] sm:$0xff] }
  0x1e   : > { %219 = vperm.xlu0 %1058, %v212_v7   ;;  %419 = vperm.xlu1 %1059, %v406_v8   ;;  %v211_v34 = vld [vmem:[%s1420_s1 + $0x20] sm:$0xff]  ;;  %v401_v59 = vld [vmem:[%s1420_s1 + $0x28] sm:$0xff]  ;;  %v402_v61 = vld [vmem:[%s1420_s1 + $0x30] sm:$0xff]  ;;  %p1087_p13 = pneg %p1086_p12 }
  0x1f   : > { %v403_v62 = vld [vmem:[%s1420_s1 + $0x38] sm:$0xff]  ;;  %v515_v63 = vld [vmem:[%s1420_s1 + $0x40] sm:$0xff] }
  0x20   : > { %934 = vmatpush3.xpose.msk.msra.mxu0 %vm242_vm1, %v204_v12  ;;  %p1094_p3 = pnand %p1093_p2, %p1087_p13 }
  0x21   : > { %935 = vmatprep.subr.mxu0 %v1146_v0 }
  0x22   : > { %414 = vperm.xlu0 %1058, %v405_v10   ;;  %409 = vperm.xlu1 %1059, %v404_v11  }
  0x24   : > { %936 = vmatpush3.xpose.msk.msra.mxu0 %vm242_vm1, %v203_v15 }
  0x25   : > { %937 = vmatprep.subr.mxu0 %v1146_v0 }
  0x26   : > { %526 = vperm.xlu0 %1058, %v518_v13   ;;  %521 = vperm.xlu1 %1059, %v517_v14  }
  0x28   : > { %938 = vmatpush3.xpose.msk.msra.mxu0 %vm242_vm1, %v202_v18 }
  0x29   : > { %939 = vmatprep.subr.mxu0 %v1146_v0 }
  0x2a   : > { %617 = vperm.xlu0 %1058, %v614_v16   ;;  %699 = vperm.xlu1 %1059, %v696_v17   ;;  %v516_v16 = vld [vmem:[%s1420_s1 + $0x48] sm:$0xff] }
  0x2c   : > { %940 = vmatpush3.xpose.msk.msra.mxu0 %vm242_vm1, %v201_v19 }
  0x2d   : > { %941 = vmatprep.subr.mxu0 %v1146_v0 }
  0x30   : > { %942 = vmatpush3.xpose.msk.msra.mxu0 %vm242_vm1, %v200_v20 }
  0x31   : > { %943 = vmatprep.subr.mxu0 %v1146_v0 }
  0x34   : > { %944 = vmatpush3.xpose.msk.msra.mxu0 %vm242_vm1, %v199_v21 }
  0x35   : > { %945 = vmatprep.subr.mxu0 %v1146_v0 }
  0x38   : > { %946 = vmatpush3.xpose.msk.msra.mxu0 %vm242_vm1, %v198_v22 }
  0x39   : > { %947 = vmatprep.subr.mxu0 %v1146_v0 }
  0x3c   : > { %948 = vmatpush3.xpose.msk.msra.mxu0 %vm242_vm1, %v197_v23 }
  0x3d   : > { %949 = vmatprep.subr.mxu0 %v1146_v0 }
  0x40   : > { %950 = vmatpush3.xpose.msk.msra.mxu0 %vm242_vm1, %v196_v24  ;;  %v613_v24 = vld [vmem:[%s1420_s1 + $0x50] sm:$0xff] }
  0x41   : > { %951 = vmatprep.subr.mxu0 %v1146_v0 }
  0x44   : > { %952 = vmatpush3.xpose.msk.msra.mxu0 %vm242_vm1, %v195_v25 }
  0x45   : > { %953 = vmatprep.subr.mxu0 %v1146_v0 }
  0x48   : > { %954 = vmatpush3.xpose.msk.msra.mxu0 %vm242_vm1, %v194_v26 }
  0x49   : > { %955 = vmatprep.subr.mxu0 %v1146_v0 }
  0x4c   : > { %956 = vmatpush3.xpose.msk.msra.mxu0 %vm242_vm1, %v193_v27 }
  0x4d   : > { %957 = vmatprep.subr.mxu0 %v1146_v0 }
  0x50   : > { %958 = vmatpush3.xpose.msk.msra.mxu0 %vm242_vm1, %v192_v28 }
  0x51   : > { %959 = vmatprep.subr.mxu0 %v1146_v0 }
  0x54   : > { %960 = vmatpush3.xpose.msk.msra.mxu0 %vm242_vm1, %v191_v29 }
  0x57   : > { %962 = vmatmul.mubr.msk.f32.vlgmr.msra.gmra.mxu0 %vm242_vm1, %v207_v30  ;;  %v695_v30 = vld [vmem:[%s1420_s1 + $0x58] sm:$0xff] }
  0x58   : > { %964 = vmatprep.mubr.msk.f32.mxu0 %vm1147_vm0, %v1146_v0 }
  0x5b   : > { %965 = vmatmul.mubr.msk.f32.gmra.mxu0 %vm242_vm1, %v208_v31 }
  0x5c   : > { %967 = vmatprep.mubr.msk.f32.mxu0 %vm1147_vm0, %v1146_v0 }
  0x5f   : > { %968 = vmatmul.mubr.msk.f32.gmra.mxu0 %vm242_vm1, %v209_v32 }
  0x60   : > { %970 = vmatprep.mubr.msk.f32.mxu0 %vm1147_vm0, %v1146_v0 }
  0x63   : > { %971 = vmatmul.mubr.msk.f32.gmra.mxu0 %vm242_vm1, %v210_v33 }
  0x64   : > { %973 = vmatprep.mubr.msk.f32.mxu0 %vm1147_vm0, %v1146_v0 }
  0x67   : > { %974 = vmatmul.mubr.msk.f32.gmra.mxu0 %vm242_vm1, %v211_v34 }
  0x91   : > { %v240_v39 = vpop.permute.xlu0 %239  ;;  %v230_v43 = vpop.permute.xlu1 %229 }
  0x95   : > { %v235_v44 = vpop.permute.xlu0 %234  ;;  %v225_v52 = vpop.permute.xlu1 %224 }
  0x99   : > { %v220_v51 = vpop.permute.xlu0 %219  ;;  %v420_v3 = vpop.permute.xlu1 %419 }
  0x9d   : > { %v415_v6 = vpop.permute.xlu0 %414  ;;  %v410_v10 = vpop.permute.xlu1 %409 }
  0xa1   : > { %v527_v17 = vpop.permute.xlu0 %526  ;;  %v522_v20 = vpop.permute.xlu1 %521 }
  0xa5   : > { %v618_v26 = vpop.permute.xlu0 %617  ;;  %v700_v32 = vpop.permute.xlu1 %699 }
 0x117   : > { %v372_v35 = vpop.f32.mrf.mxu0 }
 0x118   : > { %v373_v54 = vadd.f32 %v372_v35, %v220_v51 }
 0x119   : > { %v963_v36 = vpop.f32.mrf.mxu0 }
 0x11b   : > { %v377_v37 = vpop.f32.mrf.mxu0 }
 0x11c   : > { %v378_v53 = vadd.f32 %v377_v37, %v225_v52 }
 0x11d   : > { %v966_v38 = vpop.f32.mrf.mxu0 }
 0x11f   : > { %v382_v40 = vpop.f32.mrf.mxu0 }
 0x120   : > { %v383_v50 = vadd.f32 %v382_v40, %v230_v43 }
 0x121   : > { %v969_v41 = vpop.f32.mrf.mxu0 }
 0x123   : > { %v387_v42 = vpop.f32.mrf.mxu0 }
 0x124   : > { %v388_v47 = vadd.f32 %v387_v42, %v235_v44 }
 0x125   : > { %v972_v45 = vpop.f32.mrf.mxu0 }
 0x127   : > { %v392_v46 = vpop.f32.mrf.mxu0 }
 0x128   : > { %v393_v48 = vadd.f32 %v392_v46, %v240_v39 }
 0x129   : > { %v975_v49 = vpop.f32.mrf.mxu0 }
 0x12a   : > { %1060 = vtanh.f32 %v393_v48 }
 0x12b   : > { %1062 = vtanh.f32 %v388_v47 }
 0x12c   : > { %1064 = vtanh.f32 %v383_v50 }
 0x12d   : > { %1066 = vtanh.f32 %v378_v53 }
 0x12e   : > { %1068 = vtanh.f32 %v373_v54 }
 0x137   : > { %v1061_v55 = vpop.eup %1060 }
 0x138   : > { %977 = vmatpush3.msra.mxu1 %v1061_v55  ;;  %v1063_v56 = vpop.eup %1062 }
 0x139   : > { %978 = vmatprep.subr.mxu1 %v1146_v0  ;;  %v1065_v57 = vpop.eup %1064 }
 0x13a   : > { %979 = vmatpush3.msra.mxu1 %v1063_v56  ;;  %v1067_v58 = vpop.eup %1066 }
 0x13b   : > { %980 = vmatprep.subr.mxu1 %v1146_v0  ;;  %v1069_v60 = vpop.eup %1068 }
 0x13c   : > { %981 = vmatpush3.msra.mxu1 %v1065_v57 }
 0x13d   : > { %982 = vmatprep.subr.mxu1 %v1146_v0 }
 0x13e   : > { %983 = vmatpush3.msra.mxu1 %v1067_v58 }
 0x13f   : > { %984 = vmatprep.subr.mxu1 %v1146_v0 }
 0x140   : > { %985 = vmatpush3.msra.mxu1 %v1069_v60 }
 0x141   : > { %987 = vmatmul.mubr.msk.f32.vlgmr.msra.gmra.mxu1 %vm422_vm2, %v401_v59 }
 0x142   : > { %989 = vmatprep.mubr.msk.f32.mxu1 %vm1147_vm0, %v1146_v0 }
 0x145   : > { %990 = vmatmul.mubr.msk.f32.gmra.mxu1 %vm422_vm2, %v402_v61 }
 0x146   : > { %992 = vmatprep.mubr.msk.f32.mxu1 %vm1147_vm0, %v1146_v0 }
 0x149   : > { %993 = vmatmul.mubr.msk.f32.gmra.mxu1 %vm422_vm2, %v403_v62 }
 0x14a   : > { %1001 = vmatprep.mubr.msk.f32.mxu1 %vm529_vm3, %v515_v63 }
 0x201   : > { %v498_v1 = vpop.f32.mrf.mxu1 }
 0x202   : > { %v499_v12 = vadd.f32 %v498_v1, %v410_v10 }
 0x203   : > { %v988_v2 = vpop.f32.mrf.mxu1 }
 0x205   : > { %v503_v4 = vpop.f32.mrf.mxu1 }
 0x206   : > { %v504_v8 = vadd.f32 %v503_v4, %v415_v6 }
 0x207   : > { %v991_v5 = vpop.f32.mrf.mxu1 }
 0x209   : > { %v508_v7 = vpop.f32.mrf.mxu1 }
 0x20a   : > { %v509_v9 = vadd.f32 %v508_v7, %v420_v3 }
 0x20b   : > { %v994_v11 = vpop.f32.mrf.mxu1 }
 0x20c   : > { %1070 = vtanh.f32 %v509_v9 }
 0x20d   : > { %1072 = vtanh.f32 %v504_v8 }
 0x20e   : > { %1074 = vtanh.f32 %v499_v12 }
 0x219   : > { %v1071_v13 = vpop.eup %1070 }
 0x21a   : > { %995 = vmatprep.subr.mxu1 %v1071_v13  ;;  %v1073_v14 = vpop.eup %1072 }
 0x21b   : > { %996 = vmatpush3.msra.mxu1 %v1071_v13  ;;  %v1075_v15 = vpop.eup %1074 }
 0x21c   : > { %997 = vmatprep.subr.mxu1 %v1073_v14 }
 0x21d   : > { %998 = vmatpush3.msra.mxu1 %v1073_v14 }
 0x21e   : > { %999 = vmatprep.subr.mxu1 %v1075_v15 }
 0x21f   : > { %1000 = vmatpush3.msra.mxu1 %v1075_v15 }
 0x220   : > { %1002 = vmatmul.mubr.msk.f32.vlgmr.msra.gmra.mxu1 %vm529_vm3, %v516_v16  ;;  %1004 = vmatprep.subr.mxu1 %v1146_v0 }
 0x221   : > { %1008 = vmatprep.mubr.msk.f32.mxu1 %vm1147_vm0, %v1146_v0 }
 0x2e0   : > { %v1003_v18 = vpop.f32.mrf.mxu1 }
 0x2e1   : > { %v608_v19 = vadd.f32 %v1003_v18, %v527_v17 }
 0x2e2   : > { %v602_v21 = vpop.f32.mrf.mxu1 }
 0x2e3   : > { %1076 = vtanh.f32 %v608_v19  ;;  %v603_v22 = vadd.f32 %v602_v21, %v522_v20 }
 0x2e5   : > { %1078 = vtanh.f32 %v603_v22 }
 0x2f0   : > { %v1077_v23 = vpop.eup %1076 }
 0x2f1   : > { %1005 = vmatpush3.msra.mxu1 %v1077_v23 }
 0x2f2   : > { %v1079_v25 = vpop.eup %1078  ;;  %1006 = vmatprep.subr.mxu1 %v1146_v0 }
 0x2f3   : > { %1007 = vmatpush3.msra.mxu1 %v1079_v25 }
 0x2f4   : > { %1009 = vmatmul.mubr.msk.f32.vlgmr.msra.gmra.mxu1 %vm620_vm4, %v613_v24  ;;  %1011 = vmatprep.subr.mxu1 %v1146_v0 }
 0x2f5   : > { %1013 = vmatprep.mubr.msk.f32.mxu1 %vm1147_vm0, %v1146_v0 }
 0x3b4   : > { %v690_v27 = vpop.f32.mrf.mxu1 }
 0x3b5   : > { %v691_v28 = vadd.f32 %v690_v27, %v618_v26 }
 0x3b6   : > { %v1010_v29 = vpop.f32.mrf.mxu1 }
 0x3b7   : > { %1080 = vtanh.f32 %v691_v28 }
 0x3c4   : > { %v1081_v31 = vpop.eup %1080 }
 0x3c5   : > { %1012 = vmatpush3.msra.mxu1 %v1081_v31 }
 0x3c6   : > { %1014 = vmatmul.mubr.msk.f32.vlgmr.msra.gmra.mxu1 %vm702_vm5, %v695_v30 }
 0x486   : > { %v772_v33 = vpop.f32.mrf.mxu1 }
 0x487   : > { %v773_v34 = vadd.f32 %v772_v33, %v700_v32 }
 0x488   : > { %v1015_v0 = vpop.f32.mrf.mxu1 }
 0x489   : > { %1082 = vtanh.f32 %v773_v34 }
 0x496   : > { %v1083_v35 = vpop.eup %1082 }
 0x497   : > { %777 = vst [vmem:[%s176_s26] sm:$0x3] %v1083_v35 }
 0x498   : > { %1097 = shalt.err (!%p1094_p3)
}
 0x499   : > { %s1098_s8 = scalar_lea.hbm %s1384_s30, 32  ;;  %s1102_s17 = scalar_lea.hbm %s1422_s3, 96 }
 0x49a   : > { %p1099_p4 = scmp.ne.s32.totalorder %s1384_s30, %s1098_s8  ;;  %p1103_p9 = scmp.lt.s32.totalorder %s1384_s30, %s1422_s3 }
 0x49b   : > { %p1104_p10 = scmp.lt.s32.totalorder %s1102_s17, %s1098_s8 }
 0x49c   : > { %p1100_p7 = pnand %p1099_p4, %p1208_p5 }
 0x49d   : > { %p1105_p11 = por %p1104_p10, %p1103_p9 }
 0x49e   : > { %p1101_p8 = pneg %p1100_p7 }
 0x4a0   : > { %p1106_p12 = pnand %p1105_p11, %p1101_p8 }
 0x4a2   : > { %1109 = shalt.err (!%p1106_p12)
}
 0x4a3   : > { %1016 = dma.vmem_to_hbm [thread:$0]  (%p1208_p5), %s793_s27, 32, %s1384_s30, %s779_s4  }
 0x4a4 PF: > { %p1022_p13 = scmp.ge.s32.totalorder %s1144_s15, 2  ;;  %s804_s20 = sand.u32 1, %s1132_s12  }
 0x4a5   : > { %s805_s24 = scalar_lea.sflag [#allocation3], %s804_s20 }
 0x4a6   : > { %p1019_p0 = pnand %p1022_p13, %p1212_p6 }
 0x4a8   : > { %p1020_p1 = pneg %p1019_p0 }
 0x4aa   : > { %1127 = dma.done.wait (%p1020_p1), %s805_s24, 32  }
 0x4ab   : > { %1129 = vsyncadd (%p1020_p1), %s805_s24, 4294967264  ;;  %p13_p2 = scmp.ge.s32.totalorder %s1195_s18, 5   ;;  %s1425_s12 = smov %s1136_s13 }
 0x4ac   : > { %s1426_s13 = smov %s1140_s14  ;;  %s1427_s14 = smov %s1206_s21 }
 0x4ad   : > { %s1428_s15 = smov %s1195_s18  ;;  %15 = sbr.rel (!%p13_p2) target bundleno = 3 (0x3), region = 67 }
 0x4b2   :  { %810 = vsyncpa [#allocation3], 1 }
 0x4b3   :  { %812 = vsyncpa [#allocation3 + $0x1], 1 }

</bundles_post_ra>
